<compile_context>
chip_gen: v7x
topology: tpu7x:2x2x1
jax: 0.10.0
libtpu: 0.0.40
codegen_flags: <defaults>
</compile_context>

<pallas_src>
import functools

import jax
import jax.numpy as jnp
from jax.experimental import pallas as pl
from jax.experimental.pallas import tpu as pltpu

IGNORE_INDEX = 255
SMOOTH_FACTOR = 0.05   # SoftCrossEntropyLoss smooth_factor
ALPHA = 0.5            # FocalLoss alpha
GAMMA = 2              # FocalLoss gamma


def _abcnet_partials_kernel(*refs, hw, tile, num_classes, use_aux):
    """Accumulate per-lane partial sums for ABCnetLoss.

    refs (training): main/aux1/aux2 logits (1, C, T); labels (1, 1, T) int32;
                     out (8,) f32 in SMEM; 5 VMEM (1, T) f32 accumulators.
    refs (eval):     main logits; labels; out; 3 VMEM accumulators.

    out[0] = sum of -log p[target]    (main head, masked)
    out[1] = sum of -sum_c log p[c]   (main head, masked)
    out[2] = focal-loss sum, aux head 1 (masked)
    out[3] = focal-loss sum, aux head 2 (masked)
    out[4] = number of non-ignored pixels
    """
    if use_aux:
        (main_ref, aux1_ref, aux2_ref, lab_ref, out_ref,
         a_nll, a_sm, a_f1, a_f2, a_cnt) = refs
    else:
        (main_ref, lab_ref, out_ref, a_nll, a_sm, a_cnt) = refs
        aux1_ref = aux2_ref = a_f1 = a_f2 = None

    b = pl.program_id(0)
    j = pl.program_id(1)

    @pl.when(jnp.logical_and(b == 0, j == 0))
    def _init():
        a_nll[...] = jnp.zeros_like(a_nll)
        a_sm[...] = jnp.zeros_like(a_sm)
        a_cnt[...] = jnp.zeros_like(a_cnt)
        if use_aux:
            a_f1[...] = jnp.zeros_like(a_f1)
            a_f2[...] = jnp.zeros_like(a_f2)

    x = main_ref[0].astype(jnp.float32)          # (C, T) — cast in-kernel
    lab = lab_ref[0]                             # (1, T) int32

    # validity: not IGNORE_INDEX, and in-bounds for the (ragged) last tile.
    valid = lab != IGNORE_INDEX                  # (1, T) bool
    if hw % tile != 0:
        col = jax.lax.broadcasted_iota(jnp.int32, lab.shape, 1) + j * tile
        valid = jnp.logical_and(valid, col < hw)
    validf = valid.astype(jnp.float32)

    cls_ids = jax.lax.broadcasted_iota(jnp.int32, x.shape, 0)   # (C, T)
    t_bool = cls_ids == lab                                     # (C, T)
    onehot = t_bool.astype(jnp.float32)

    # ---- main head: label-smoothed CE partials (no full logp tensor) ----
    m = jnp.max(x, axis=0, keepdims=True)                               # (1, T)
    lse = m + jnp.log(jnp.sum(jnp.exp(x - m), axis=0, keepdims=True))   # (1, T)
    x_t = jnp.sum(onehot * x, axis=0, keepdims=True)                    # x[target]
    x_sum = jnp.sum(x, axis=0, keepdims=True)

    # `where` (not multiply) so NaN/Inf garbage in padded lanes never leaks.
    a_nll[...] += jnp.where(valid, lse - x_t, 0.0)
    a_sm[...] += jnp.where(valid, jnp.float32(num_classes) * lse - x_sum, 0.0)
    a_cnt[...] += validf

    # ---- aux heads: focal loss (per-class binary CE with logits) ----
    if use_aux:
        def focal_lane(a_raw):
            a = a_raw.astype(jnp.float32)
            e = jnp.exp(-jnp.abs(a))                                  # exp(-|a|)
            logpt = jnp.maximum(a, 0.0) - a * onehot + jnp.log1p(e)   # BCE
            # pt = exp(-logpt) reconstructed from e (saves one exp/element):
            #   1 - pt = (e if sign(a) matches target else 1) / (1 + e)
            match = jnp.logical_not(jnp.logical_xor(a >= 0.0, t_bool))
            one_minus_pt = jnp.where(match, e, 1.0) / (1.0 + e)
            if GAMMA == 2:
                focal_term = one_minus_pt * one_minus_pt              # square, no pow
            else:
                focal_term = one_minus_pt ** GAMMA
            if ALPHA == 0.5:
                w = jnp.float32(0.5)            # alpha*t + (1-alpha)*(1-t) == 0.5
            else:
                w = ALPHA * onehot + (1.0 - ALPHA) * (1.0 - onehot)
            lane = jnp.sum(focal_term * logpt * w, axis=0, keepdims=True)  # (1, T)
            return jnp.where(valid, lane, 0.0)

        a_f1[...] += focal_lane(aux1_ref[0])
        a_f2[...] += focal_lane(aux2_ref[0])

    # ---- single cross-lane (XLU) reduction on the very last grid step ----
    @pl.when(jnp.logical_and(b == pl.num_programs(0) - 1,
                             j == pl.num_programs(1) - 1))
    def _finalize():
        out_ref[0] = jnp.sum(a_nll[...])
        out_ref[1] = jnp.sum(a_sm[...])
        if use_aux:
            out_ref[2] = jnp.sum(a_f1[...])
            out_ref[3] = jnp.sum(a_f2[...])
        else:
            out_ref[2] = jnp.float32(0.0)
            out_ref[3] = jnp.float32(0.0)
        out_ref[4] = jnp.sum(a_cnt[...])
        out_ref[5] = jnp.float32(0.0)
        out_ref[6] = jnp.float32(0.0)
        out_ref[7] = jnp.float32(0.0)


def _choose_tile(hw, c, itemsize, n_heads, requested):
    """Lane tile: as large as a ~12 MiB double-buffered input budget allows."""
    if requested is not None:
        tile = int(requested)
    else:
        per_lane = n_heads * 2 * c * itemsize + 2 * 4 + 8 * 4  # inputs + labels + acc
        tile = (12 * 1024 * 1024) // per_lane
    tile = max(128, min(tile, 8192))
    tile = (tile // 128) * 128
    if hw < 128:
        return hw                       # lane block == full array dim (allowed)
    return max(128, min(tile, (hw // 128) * 128))   # never exceed the array dim


@functools.partial(jax.jit, static_argnames=("training", "tile_hw"))
def abcnet_loss(logits, labels, training=True, tile_hw=None):
    """ABCnetLoss.forward.

    logits: tuple/list of 3 NCHW arrays (training path) or a single NCHW array.
    labels: (B, H, W) integer labels; IGNORE_INDEX marks ignored pixels.
    """
    if training and isinstance(logits, (tuple, list)) and len(logits) == 3:
        heads = list(logits)
        use_aux = True
    else:
        heads = [logits[0] if isinstance(logits, (tuple, list)) else logits]
        use_aux = False

    B, C, H, W = heads[0].shape
    assert C < IGNORE_INDEX, "num classes must not collide with IGNORE_INDEX"
    HW = H * W
    N = B * HW

    # Free reshapes only: keep original dtype and NCHW-contiguous HBM layout.
    heads = [h.reshape(B, C, HW) for h in heads]
    lab = labels.reshape(B, 1, HW).astype(jnp.int32)

    itemsize = jnp.dtype(heads[0].dtype).itemsize
    tile = _choose_tile(HW, C, itemsize, len(heads), tile_hw)
    num_tiles = pl.cdiv(HW, tile)

    kernel = functools.partial(_abcnet_partials_kernel, hw=HW, tile=tile,
                               num_classes=C, use_aux=use_aux)

    logit_spec = pl.BlockSpec((1, C, tile), lambda b, j: (b, 0, j))
    lab_spec = pl.BlockSpec((1, 1, tile), lambda b, j: (b, 0, j))
    n_acc = 5 if use_aux else 3
    scratch = [pltpu.VMEM((1, tile), jnp.float32) for _ in range(n_acc)]

    # TODO(synk): v7x megacore — add a leading "parallel" grid axis splitting the
    # HW-tile range across the 2 TensorCores with per-core (2, 8) partial outputs.
    partials = pl.pallas_call(
        kernel,
        out_shape=jax.ShapeDtypeStruct((8,), jnp.float32),
        grid_spec=pltpu.PrefetchScalarGridSpec(
            num_scalar_prefetch=0,
            grid=(B, num_tiles),
            in_specs=[logit_spec] * len(heads) + [lab_spec],
            out_specs=pl.BlockSpec(memory_space=pltpu.MemorySpace.SMEM),
            scratch_shapes=scratch,
        ),
        compiler_params=pltpu.CompilerParams(
            dimension_semantics=("arbitrary", "arbitrary"),
            vmem_limit_bytes=32 * 1024 * 1024,
        ),
    )(*heads, lab)

    nll_sum, smooth_sum, f1_sum, f2_sum, valid_cnt = (
        partials[0], partials[1], partials[2], partials[3], partials[4])

    # SoftCrossEntropyLoss: mean over ALL pixels (ignored entries contribute 0).
    total = jnp.float32(N)
    loss = ((1.0 - SMOOTH_FACTOR) * nll_sum + (SMOOTH_FACTOR / C) * smooth_sum) / total

    if use_aux:
        # FocalLoss: per-class mean over non-ignored pixels, summed over classes
        # == (sum over classes & valid pixels) / valid_count.
        denom = jnp.maximum(valid_cnt, 1.0)   # guard only the all-ignored corner case
        loss = loss + (f1_sum + f2_sum) / denom
    return loss


# ----------------------------- pure-JAX references -----------------------------

def _reference_ce(logit_main, labels):
    B, C, H, W = logit_main.shape
    lab = labels.astype(jnp.int32)
    valid = lab != IGNORE_INDEX
    logp = jax.nn.log_softmax(logit_main.astype(jnp.float32), axis=1)
    lab0 = jnp.where(valid, lab, 0)
    nll = -jnp.take_along_axis(logp, lab0[:, None], axis=1)[:, 0]
    smooth = -jnp.sum(logp, axis=1)
    nll = jnp.where(valid, nll, 0.0)
    smooth = jnp.where(valid, smooth, 0.0)
    return (1.0 - SMOOTH_FACTOR) * jnp.mean(nll) + (SMOOTH_FACTOR / C) * jnp.mean(smooth)


def _reference_loss(logits, labels):
    """Pure-JAX reference of the training-path ABCnetLoss (for checking)."""
    logit_main, logit_aux1, logit_aux2 = logits
    C = logit_main.shape[1]
    lab = labels.astype(jnp.int32)
    valid = lab != IGNORE_INDEX
    validf = valid.astype(jnp.float32)
    onehot = jax.nn.one_hot(lab, C, axis=1, dtype=jnp.float32)   # (B, C, H, W)

    def focal(a):
        a = a.astype(jnp.float32)
        t = onehot
        logpt = jnp.maximum(a, 0.0) - a * t + jnp.log1p(jnp.exp(-jnp.abs(a)))
        pt = jnp.exp(-logpt)
        loss = (1.0 - pt) ** GAMMA * logpt * (ALPHA * t + (1.0 - ALPHA) * (1.0 - t))
        loss = loss * validf[:, None]
        return jnp.sum(loss) / jnp.sum(validf)

    return _reference_ce(logit_main, labels) + focal(logit_aux1) + focal(logit_aux2)


if __name__ == "__main__":
    key = jax.random.PRNGKey(0)

    # --- training path: 3 heads ---
    B, C, H, W = 2, 4, 16, 16
    k1, k2, k3, k4, k5 = jax.random.split(key, 5)
    logit_main = jax.random.normal(k1, (B, C, H, W), jnp.float32)
    logit_aux1 = jax.random.normal(k2, (B, C, H, W), jnp.float32)
    logit_aux2 = jax.random.normal(k3, (B, C, H, W), jnp.float32)
    labels = jax.random.randint(k4, (B, H, W), 0, C)
    labels = jnp.where(jax.random.uniform(k5, (B, H, W)) < 0.1,
                       IGNORE_INDEX, labels).astype(jnp.int32)

    logits = (logit_main, logit_aux1, logit_aux2)
    loss = jax.block_until_ready(abcnet_loss(logits, labels, training=True))
    ref = jax.block_until_ready(_reference_loss(logits, labels))
    assert jnp.isfinite(loss), loss
    assert jnp.allclose(loss, ref, rtol=1e-3, atol=1e-3), (float(loss), float(ref))

    # --- eval path: single head, CE only (no focal work, no duplicated DMA) ---
    loss_e = jax.block_until_ready(abcnet_loss(logit_main, labels, training=False))
    ref_e = jax.block_until_ready(_reference_ce(logit_main, labels))
    assert jnp.allclose(loss_e, ref_e, rtol=1e-3, atol=1e-3), (float(loss_e), float(ref_e))

    # --- ragged tail: HW not a multiple of the lane tile (in-kernel iota mask) ---
    B2, C2, H2, W2 = 1, 5, 16, 20                 # HW = 320, forced tile 256
    q1, q2, q3, q4, q5 = jax.random.split(jax.random.PRNGKey(1), 5)
    lm = jax.random.normal(q1, (B2, C2, H2, W2), jnp.float32)
    la1 = jax.random.normal(q2, (B2, C2, H2, W2), jnp.float32)
    la2 = jax.random.normal(q3, (B2, C2, H2, W2), jnp.float32)
    lab2 = jax.random.randint(q4, (B2, H2, W2), 0, C2)
    lab2 = jnp.where(jax.random.uniform(q5, (B2, H2, W2)) < 0.1,
                     IGNORE_INDEX, lab2).astype(jnp.int32)
    logits2 = (lm, la1, la2)
    loss2 = jax.block_until_ready(abcnet_loss(logits2, lab2, training=True, tile_hw=256))
    ref2 = jax.block_until_ready(_reference_loss(logits2, lab2))
    assert jnp.allclose(loss2, ref2, rtol=1e-3, atol=1e-3), (float(loss2), float(ref2))

    print("KERNEL_OK")
</pallas_src>

<mosaic_0001>
module attributes {stable_mosaic.version = 11 : i64} {
  func.func @_abcnet_partials_kernel(%arg0: i32, %arg1: i32, %arg2: memref<1x4x256xf32, #tpu.memory_space<vmem>>, %arg3: memref<1x4x256xf32, #tpu.memory_space<vmem>>, %arg4: memref<1x4x256xf32, #tpu.memory_space<vmem>>, %arg5: memref<1x1x256xi32, #tpu.memory_space<vmem>>, %arg6: memref<8xf32, #tpu.memory_space<smem>>, %arg7: memref<1x256xf32, #tpu.memory_space<vmem>>, %arg8: memref<1x256xf32, #tpu.memory_space<vmem>>, %arg9: memref<1x256xf32, #tpu.memory_space<vmem>>, %arg10: memref<1x256xf32, #tpu.memory_space<vmem>>, %arg11: memref<1x256xf32, #tpu.memory_space<vmem>>) attributes {dimension_semantics = [#tpu.dimension_semantics<arbitrary>, #tpu.dimension_semantics<arbitrary>], iteration_bounds = array<i64: 2, 1>, scalar_prefetch = 0 : i64, scratch_operands = 5 : i64, tpu.core_type = #tpu.core_type<tc>, window_params = [{transform_indices = @transform_0, window_bounds = array<i64: 1, 4, 256>}, {transform_indices = @transform_1, window_bounds = array<i64: 1, 4, 256>}, {transform_indices = @transform_2, window_bounds = array<i64: 1, 4, 256>}, {transform_indices = @transform_3, window_bounds = array<i64: 1, 1, 256>}, {transform_indices = @transform_4, window_bounds = array<i64: 8>}]} {
    %c0_i32 = arith.constant 0 : i32
    %0 = arith.cmpi eq, %arg0, %c0_i32 : i32
    %c0_i32_0 = arith.constant 0 : i32
    %1 = arith.cmpi eq, %arg1, %c0_i32_0 : i32
    %2 = arith.andi %0, %1 : i1
    %3 = arith.extui %2 : i1 to i32
    %c0_i32_1 = arith.constant 0 : i32
    %4 = arith.cmpi ne, %3, %c0_i32_1 : i32
    scf.if %4 {
      %cst_59 = arith.constant 0.000000e+00 : f32
      %118 = vector.broadcast %cst_59 : f32 to vector<1x256xf32>
      %c0_60 = arith.constant 0 : index
      %c0_61 = arith.constant 0 : index
      %119 = vector.load %arg7[%c0_60, %c0_61] : memref<1x256xf32, #tpu.memory_space<vmem>>, vector<1x256xf32>
      tpu.vector_store %arg7[%c0_60, %c0_61], %118 {strides = array<i32>} : memref<1x256xf32, #tpu.memory_space<vmem>>, vector<1x256xf32>,
      %cst_62 = arith.constant 0.000000e+00 : f32
      %120 = vector.broadcast %cst_62 : f32 to vector<1x256xf32>
      %c0_63 = arith.constant 0 : index
      %c0_64 = arith.constant 0 : index
      %121 = vector.load %arg8[%c0_63, %c0_64] : memref<1x256xf32, #tpu.memory_space<vmem>>, vector<1x256xf32>
      tpu.vector_store %arg8[%c0_63, %c0_64], %120 {strides = array<i32>} : memref<1x256xf32, #tpu.memory_space<vmem>>, vector<1x256xf32>,
      %cst_65 = arith.constant 0.000000e+00 : f32
      %122 = vector.broadcast %cst_65 : f32 to vector<1x256xf32>
      %c0_66 = arith.constant 0 : index
      %c0_67 = arith.constant 0 : index
      %123 = vector.load %arg11[%c0_66, %c0_67] : memref<1x256xf32, #tpu.memory_space<vmem>>, vector<1x256xf32>
      tpu.vector_store %arg11[%c0_66, %c0_67], %122 {strides = array<i32>} : memref<1x256xf32, #tpu.memory_space<vmem>>, vector<1x256xf32>,
      %cst_68 = arith.constant 0.000000e+00 : f32
      %124 = vector.broadcast %cst_68 : f32 to vector<1x256xf32>
      %c0_69 = arith.constant 0 : index
      %c0_70 = arith.constant 0 : index
      %125 = vector.load %arg9[%c0_69, %c0_70] : memref<1x256xf32, #tpu.memory_space<vmem>>, vector<1x256xf32>
      tpu.vector_store %arg9[%c0_69, %c0_70], %124 {strides = array<i32>} : memref<1x256xf32, #tpu.memory_space<vmem>>, vector<1x256xf32>,
      %cst_71 = arith.constant 0.000000e+00 : f32
      %126 = vector.broadcast %cst_71 : f32 to vector<1x256xf32>
      %c0_72 = arith.constant 0 : index
      %c0_73 = arith.constant 0 : index
      %127 = vector.load %arg10[%c0_72, %c0_73] : memref<1x256xf32, #tpu.memory_space<vmem>>, vector<1x256xf32>
      tpu.vector_store %arg10[%c0_72, %c0_73], %126 {strides = array<i32>} : memref<1x256xf32, #tpu.memory_space<vmem>>, vector<1x256xf32>,
    } else {
    }
    %c0 = arith.constant 0 : index
    %c0_2 = arith.constant 0 : index
    %c0_3 = arith.constant 0 : index
    %5 = vector.load %arg2[%c0, %c0_2, %c0_3] : memref<1x4x256xf32, #tpu.memory_space<vmem>>, vector<1x4x256xf32>
    %6 = vector.shape_cast %5 : vector<1x4x256xf32> to vector<4x256xf32>
    %c0_4 = arith.constant 0 : index
    %c0_5 = arith.constant 0 : index
    %c0_6 = arith.constant 0 : index
    %7 = vector.load %arg5[%c0_4, %c0_5, %c0_6] : memref<1x1x256xi32, #tpu.memory_space<vmem>>, vector<1x1x256xi32>
    %8 = vector.shape_cast %7 : vector<1x1x256xi32> to vector<1x256xi32>
    %c255_i32 = arith.constant 255 : i32
    %9 = vector.broadcast %c255_i32 : i32 to vector<1x256xi32>
    %10 = arith.cmpi ne, %8, %9 : vector<1x256xi32>
    %11 = arith.extui %10 : vector<1x256xi1> to vector<1x256xi32>
    %12 = arith.sitofp %11 : vector<1x256xi32> to vector<1x256xf32>
    %13 = tpu.iota {dimensions = array<i32: 0>} : vector<4x256xi32>
    %14 = vector.broadcast %8 : vector<1x256xi32> to vector<4x256xi32>
    %15 = arith.cmpi eq, %13, %14 : vector<4x256xi32>
    %16 = arith.extui %15 : vector<4x256xi1> to vector<4x256xi32>
    %17 = arith.sitofp %16 : vector<4x256xi32> to vector<4x256xf32>
    %cst = arith.constant dense<0xFF800000> : vector<256xf32>
    %18 = vector.multi_reduction <maximumf>, %6, %cst [0] : vector<4x256xf32> to vector<256xf32>
    %19 = vector.shape_cast %18 : vector<256xf32> to vector<1x256xf32>
    %20 = vector.broadcast %19 : vector<1x256xf32> to vector<4x256xf32>
    %21 = arith.subf %6, %20 : vector<4x256xf32>
    %22 = math.exp %21 : vector<4x256xf32>
    %cst_7 = arith.constant dense<0.000000e+00> : vector<256xf32>
    %23 = vector.multi_reduction <add>, %22, %cst_7 [0] : vector<4x256xf32> to vector<256xf32>
    %24 = vector.shape_cast %23 : vector<256xf32> to vector<1x256xf32>
    %25 = math.log %24 : vector<1x256xf32>
    %26 = arith.addf %19, %25 : vector<1x256xf32>
    %27 = arith.mulf %17, %6 : vector<4x256xf32>
    %cst_8 = arith.constant dense<0.000000e+00> : vector<256xf32>
    %28 = vector.multi_reduction <add>, %27, %cst_8 [0] : vector<4x256xf32> to vector<256xf32>
    %29 = vector.shape_cast %28 : vector<256xf32> to vector<1x256xf32>
    %cst_9 = arith.constant dense<0.000000e+00> : vector<256xf32>
    %30 = vector.multi_reduction <add>, %6, %cst_9 [0] : vector<4x256xf32> to vector<256xf32>
    %31 = vector.shape_cast %30 : vector<256xf32> to vector<1x256xf32>
    %c0_10 = arith.constant 0 : index
    %c0_11 = arith.constant 0 : index
    %32 = vector.load %arg7[%c0_10, %c0_11] : memref<1x256xf32, #tpu.memory_space<vmem>>, vector<1x256xf32>
    %33 = arith.subf %26, %29 : vector<1x256xf32>
    %cst_12 = arith.constant 0.000000e+00 : f32
    %34 = vector.broadcast %cst_12 : f32 to vector<1x256xf32>
    %35 = arith.select %10, %33, %34 : vector<1x256xi1>, vector<1x256xf32>
    %36 = arith.addf %32, %35 : vector<1x256xf32>
    %c0_13 = arith.constant 0 : index
    %c0_14 = arith.constant 0 : index
    %37 = vector.load %arg7[%c0_13, %c0_14] : memref<1x256xf32, #tpu.memory_space<vmem>>, vector<1x256xf32>
    tpu.vector_store %arg7[%c0_13, %c0_14], %36 {strides = array<i32>} : memref<1x256xf32, #tpu.memory_space<vmem>>, vector<1x256xf32>,
    %c0_15 = arith.constant 0 : index
    %c0_16 = arith.constant 0 : index
    %38 = vector.load %arg8[%c0_15, %c0_16] : memref<1x256xf32, #tpu.memory_space<vmem>>, vector<1x256xf32>
    %cst_17 = arith.constant 4.000000e+00 : f32
    %39 = vector.broadcast %cst_17 : f32 to vector<1x256xf32>
    %40 = arith.mulf %39, %26 : vector<1x256xf32>
    %41 = arith.subf %40, %31 : vector<1x256xf32>
    %cst_18 = arith.constant 0.000000e+00 : f32
    %42 = vector.broadcast %cst_18 : f32 to vector<1x256xf32>
    %43 = arith.select %10, %41, %42 : vector<1x256xi1>, vector<1x256xf32>
    %44 = arith.addf %38, %43 : vector<1x256xf32>
    %c0_19 = arith.constant 0 : index
    %c0_20 = arith.constant 0 : index
    %45 = vector.load %arg8[%c0_19, %c0_20] : memref<1x256xf32, #tpu.memory_space<vmem>>, vector<1x256xf32>
    tpu.vector_store %arg8[%c0_19, %c0_20], %44 {strides = array<i32>} : memref<1x256xf32, #tpu.memory_space<vmem>>, vector<1x256xf32>,
    %c0_21 = arith.constant 0 : index
    %c0_22 = arith.constant 0 : index
    %46 = vector.load %arg11[%c0_21, %c0_22] : memref<1x256xf32, #tpu.memory_space<vmem>>, vector<1x256xf32>
    %47 = arith.addf %46, %12 : vector<1x256xf32>
    %c0_23 = arith.constant 0 : index
    %c0_24 = arith.constant 0 : index
    %48 = vector.load %arg11[%c0_23, %c0_24] : memref<1x256xf32, #tpu.memory_space<vmem>>, vector<1x256xf32>
    tpu.vector_store %arg11[%c0_23, %c0_24], %47 {strides = array<i32>} : memref<1x256xf32, #tpu.memory_space<vmem>>, vector<1x256xf32>,
    %c0_25 = arith.constant 0 : index
    %c0_26 = arith.constant 0 : index
    %49 = vector.load %arg9[%c0_25, %c0_26] : memref<1x256xf32, #tpu.memory_space<vmem>>, vector<1x256xf32>
    %c0_27 = arith.constant 0 : index
    %c0_28 = arith.constant 0 : index
    %c0_29 = arith.constant 0 : index
    %50 = vector.load %arg3[%c0_27, %c0_28, %c0_29] : memref<1x4x256xf32, #tpu.memory_space<vmem>>, vector<1x4x256xf32>
    %51 = vector.shape_cast %50 : vector<1x4x256xf32> to vector<4x256xf32>
    %52 = math.absf %51 : vector<4x256xf32>
    %cst_30 = arith.constant 0.000000e+00 : f32
    %53 = vector.broadcast %cst_30 : f32 to vector<4x256xf32>
    %54 = arith.subf %53, %52 : vector<4x256xf32>
    %55 = math.exp %54 : vector<4x256xf32>
    %cst_31 = arith.constant 0.000000e+00 : f32
    %56 = vector.broadcast %cst_31 : f32 to vector<4x256xf32>
    %57 = arith.maximumf %51, %56 : vector<4x256xf32>
    %58 = arith.mulf %51, %17 : vector<4x256xf32>
    %59 = arith.subf %57, %58 : vector<4x256xf32>
    %60 = math.log1p %55 : vector<4x256xf32>
    %61 = arith.addf %59, %60 : vector<4x256xf32>
    %cst_32 = arith.constant 0.000000e+00 : f32
    %62 = vector.broadcast %cst_32 : f32 to vector<4x256xf32>
    %63 = arith.cmpf oge, %51, %62 : vector<4x256xf32>
    %64 = arith.xori %63, %15 : vector<4x256xi1>
    %cst_33 = arith.constant dense<true> : vector<4x256xi1>
    %65 = arith.xori %64, %cst_33 : vector<4x256xi1>
    %cst_34 = arith.constant 1.000000e+00 : f32
    %66 = vector.broadcast %cst_34 : f32 to vector<4x256xf32>
    %67 = arith.select %65, %55, %66 : vector<4x256xi1>, vector<4x256xf32>
    %cst_35 = arith.constant 1.000000e+00 : f32
    %68 = vector.broadcast %cst_35 : f32 to vector<4x256xf32>
    %69 = arith.addf %68, %55 : vector<4x256xf32>
    %70 = arith.divf %67, %69 : vector<4x256xf32>
    %71 = arith.mulf %70, %70 : vector<4x256xf32>
    %72 = arith.mulf %71, %61 : vector<4x256xf32>
    %cst_36 = arith.constant 5.000000e-01 : f32
    %73 = vector.broadcast %cst_36 : f32 to vector<4x256xf32>
    %74 = arith.mulf %72, %73 : vector<4x256xf32>
    %cst_37 = arith.constant dense<0.000000e+00> : vector<256xf32>
    %75 = vector.multi_reduction <add>, %74, %cst_37 [0] : vector<4x256xf32> to vector<256xf32>
    %76 = vector.shape_cast %75 : vector<256xf32> to vector<1x256xf32>
    %cst_38 = arith.constant 0.000000e+00 : f32
    %77 = vector.broadcast %cst_38 : f32 to vector<1x256xf32>
    %78 = arith.select %10, %76, %77 : vector<1x256xi1>, vector<1x256xf32>
    %79 = arith.addf %49, %78 : vector<1x256xf32>
    %c0_39 = arith.constant 0 : index
    %c0_40 = arith.constant 0 : index
    %80 = vector.load %arg9[%c0_39, %c0_40] : memref<1x256xf32, #tpu.memory_space<vmem>>, vector<1x256xf32>
    tpu.vector_store %arg9[%c0_39, %c0_40], %79 {strides = array<i32>} : memref<1x256xf32, #tpu.memory_space<vmem>>, vector<1x256xf32>,
    %c0_41 = arith.constant 0 : index
    %c0_42 = arith.constant 0 : index
    %81 = vector.load %arg10[%c0_41, %c0_42] : memref<1x256xf32, #tpu.memory_space<vmem>>, vector<1x256xf32>
    %c0_43 = arith.constant 0 : index
    %c0_44 = arith.constant 0 : index
    %c0_45 = arith.constant 0 : index
    %82 = vector.load %arg4[%c0_43, %c0_44, %c0_45] : memref<1x4x256xf32, #tpu.memory_space<vmem>>, vector<1x4x256xf32>
    %83 = vector.shape_cast %82 : vector<1x4x256xf32> to vector<4x256xf32>
    %84 = math.absf %83 : vector<4x256xf32>
    %cst_46 = arith.constant 0.000000e+00 : f32
    %85 = vector.broadcast %cst_46 : f32 to vector<4x256xf32>
    %86 = arith.subf %85, %84 : vector<4x256xf32>
    %87 = math.exp %86 : vector<4x256xf32>
    %cst_47 = arith.constant 0.000000e+00 : f32
    %88 = vector.broadcast %cst_47 : f32 to vector<4x256xf32>
    %89 = arith.maximumf %83, %88 : vector<4x256xf32>
    %90 = arith.mulf %83, %17 : vector<4x256xf32>
    %91 = arith.subf %89, %90 : vector<4x256xf32>
    %92 = math.log1p %87 : vector<4x256xf32>
    %93 = arith.addf %91, %92 : vector<4x256xf32>
    %cst_48 = arith.constant 0.000000e+00 : f32
    %94 = vector.broadcast %cst_48 : f32 to vector<4x256xf32>
    %95 = arith.cmpf oge, %83, %94 : vector<4x256xf32>
    %96 = arith.xori %95, %15 : vector<4x256xi1>
    %cst_49 = arith.constant dense<true> : vector<4x256xi1>
    %97 = arith.xori %96, %cst_49 : vector<4x256xi1>
    %cst_50 = arith.constant 1.000000e+00 : f32
    %98 = vector.broadcast %cst_50 : f32 to vector<4x256xf32>
    %99 = arith.select %97, %87, %98 : vector<4x256xi1>, vector<4x256xf32>
    %cst_51 = arith.constant 1.000000e+00 : f32
    %100 = vector.broadcast %cst_51 : f32 to vector<4x256xf32>
    %101 = arith.addf %100, %87 : vector<4x256xf32>
    %102 = arith.divf %99, %101 : vector<4x256xf32>
    %103 = arith.mulf %102, %102 : vector<4x256xf32>
    %104 = arith.mulf %103, %93 : vector<4x256xf32>
    %cst_52 = arith.constant 5.000000e-01 : f32
    %105 = vector.broadcast %cst_52 : f32 to vector<4x256xf32>
    %106 = arith.mulf %104, %105 : vector<4x256xf32>
    %cst_53 = arith.constant dense<0.000000e+00> : vector<256xf32>
    %107 = vector.multi_reduction <add>, %106, %cst_53 [0] : vector<4x256xf32> to vector<256xf32>
    %108 = vector.shape_cast %107 : vector<256xf32> to vector<1x256xf32>
    %cst_54 = arith.constant 0.000000e+00 : f32
    %109 = vector.broadcast %cst_54 : f32 to vector<1x256xf32>
    %110 = arith.select %10, %108, %109 : vector<1x256xi1>, vector<1x256xf32>
    %111 = arith.addf %81, %110 : vector<1x256xf32>
    %c0_55 = arith.constant 0 : index
    %c0_56 = arith.constant 0 : index
    %112 = vector.load %arg10[%c0_55, %c0_56] : memref<1x256xf32, #tpu.memory_space<vmem>>, vector<1x256xf32>
    tpu.vector_store %arg10[%c0_55, %c0_56], %111 {strides = array<i32>} : memref<1x256xf32, #tpu.memory_space<vmem>>, vector<1x256xf32>,
    %c1_i32 = arith.constant 1 : i32
    %113 = arith.cmpi eq, %arg0, %c1_i32 : i32
    %c0_i32_57 = arith.constant 0 : i32
    %114 = arith.cmpi eq, %arg1, %c0_i32_57 : i32
    %115 = arith.andi %113, %114 : i1
    %116 = arith.extui %115 : i1 to i32
    %c0_i32_58 = arith.constant 0 : i32
    %117 = arith.cmpi ne, %116, %c0_i32_58 : i32
    scf.if %117 {
      %c0_59 = arith.constant 0 : index
      %c0_60 = arith.constant 0 : index
      %118 = vector.load %arg7[%c0_59, %c0_60] : memref<1x256xf32, #tpu.memory_space<vmem>>, vector<1x256xf32>
      %119 = vector.shape_cast %118 : vector<1x256xf32> to vector<1x1x256xf32>
      %cst_61 = arith.constant dense<0.000000e+00> : vector<1xf32>
      %120 = vector.multi_reduction <add>, %119, %cst_61 [1, 2] : vector<1x1x256xf32> to vector<1xf32>
      %121 = vector.shape_cast %120 : vector<1xf32> to vector<1x1x1xf32>
      %122 = vector.extract %121[0, 0, 0] : f32 from vector<1x1x1xf32>
      %c0_62 = arith.constant 0 : index
      %123 = memref.load %arg6[%c0_62] : memref<8xf32, #tpu.memory_space<smem>>
      memref.store %122, %arg6[%c0_62] : memref<8xf32, #tpu.memory_space<smem>>
      %c0_63 = arith.constant 0 : index
      %c0_64 = arith.constant 0 : index
      %124 = vector.load %arg8[%c0_63, %c0_64] : memref<1x256xf32, #tpu.memory_space<vmem>>, vector<1x256xf32>
      %125 = vector.shape_cast %124 : vector<1x256xf32> to vector<1x1x256xf32>
      %cst_65 = arith.constant dense<0.000000e+00> : vector<1xf32>
      %126 = vector.multi_reduction <add>, %125, %cst_65 [1, 2] : vector<1x1x256xf32> to vector<1xf32>
      %127 = vector.shape_cast %126 : vector<1xf32> to vector<1x1x1xf32>
      %128 = vector.extract %127[0, 0, 0] : f32 from vector<1x1x1xf32>
      %c1 = arith.constant 1 : index
      %129 = memref.load %arg6[%c1] : memref<8xf32, #tpu.memory_space<smem>>
      memref.store %128, %arg6[%c1] : memref<8xf32, #tpu.memory_space<smem>>
      %c0_66 = arith.constant 0 : index
      %c0_67 = arith.constant 0 : index
      %130 = vector.load %arg9[%c0_66, %c0_67] : memref<1x256xf32, #tpu.memory_space<vmem>>, vector<1x256xf32>
      %131 = vector.shape_cast %130 : vector<1x256xf32> to vector<1x1x256xf32>
      %cst_68 = arith.constant dense<0.000000e+00> : vector<1xf32>
      %132 = vector.multi_reduction <add>, %131, %cst_68 [1, 2] : vector<1x1x256xf32> to vector<1xf32>
      %133 = vector.shape_cast %132 : vector<1xf32> to vector<1x1x1xf32>
      %134 = vector.extract %133[0, 0, 0] : f32 from vector<1x1x1xf32>
      %c2 = arith.constant 2 : index
      %135 = memref.load %arg6[%c2] : memref<8xf32, #tpu.memory_space<smem>>
      memref.store %134, %arg6[%c2] : memref<8xf32, #tpu.memory_space<smem>>
      %c0_69 = arith.constant 0 : index
      %c0_70 = arith.constant 0 : index
      %136 = vector.load %arg10[%c0_69, %c0_70] : memref<1x256xf32, #tpu.memory_space<vmem>>, vector<1x256xf32>
      %137 = vector.shape_cast %136 : vector<1x256xf32> to vector<1x1x256xf32>
      %cst_71 = arith.constant dense<0.000000e+00> : vector<1xf32>
      %138 = vector.multi_reduction <add>, %137, %cst_71 [1, 2] : vector<1x1x256xf32> to vector<1xf32>
      %139 = vector.shape_cast %138 : vector<1xf32> to vector<1x1x1xf32>
      %140 = vector.extract %139[0, 0, 0] : f32 from vector<1x1x1xf32>
      %c3 = arith.constant 3 : index
      %141 = memref.load %arg6[%c3] : memref<8xf32, #tpu.memory_space<smem>>
      memref.store %140, %arg6[%c3] : memref<8xf32, #tpu.memory_space<smem>>
      %c0_72 = arith.constant 0 : index
      %c0_73 = arith.constant 0 : index
      %142 = vector.load %arg11[%c0_72, %c0_73] : memref<1x256xf32, #tpu.memory_space<vmem>>, vector<1x256xf32>
      %143 = vector.shape_cast %142 : vector<1x256xf32> to vector<1x1x256xf32>
      %cst_74 = arith.constant dense<0.000000e+00> : vector<1xf32>
      %144 = vector.multi_reduction <add>, %143, %cst_74 [1, 2] : vector<1x1x256xf32> to vector<1xf32>
      %145 = vector.shape_cast %144 : vector<1xf32> to vector<1x1x1xf32>
      %146 = vector.extract %145[0, 0, 0] : f32 from vector<1x1x1xf32>
      %c4 = arith.constant 4 : index
      %147 = memref.load %arg6[%c4] : memref<8xf32, #tpu.memory_space<smem>>
      memref.store %146, %arg6[%c4] : memref<8xf32, #tpu.memory_space<smem>>
      %cst_75 = arith.constant 0.000000e+00 : f32
      %c5 = arith.constant 5 : index
      %148 = memref.load %arg6[%c5] : memref<8xf32, #tpu.memory_space<smem>>
      memref.store %cst_75, %arg6[%c5] : memref<8xf32, #tpu.memory_space<smem>>
      %cst_76 = arith.constant 0.000000e+00 : f32
      %c6 = arith.constant 6 : index
      %149 = memref.load %arg6[%c6] : memref<8xf32, #tpu.memory_space<smem>>
      memref.store %cst_76, %arg6[%c6] : memref<8xf32, #tpu.memory_space<smem>>
      %cst_77 = arith.constant 0.000000e+00 : f32
      %c7 = arith.constant 7 : index
      %150 = memref.load %arg6[%c7] : memref<8xf32, #tpu.memory_space<smem>>
      memref.store %cst_77, %arg6[%c7] : memref<8xf32, #tpu.memory_space<smem>>
    } else {
    }
    return
  }
  func.func @transform_0(%arg0: i32, %arg1: i32) -> (i32, i32, i32) {
    %c0_i32 = arith.constant 0 : i32
    %c0_i32_0 = arith.constant 0 : i32
    return %arg0, %c0_i32, %arg1 : i32, i32, i32
  }
  func.func @transform_1(%arg0: i32, %arg1: i32) -> (i32, i32, i32) {
    %c0_i32 = arith.constant 0 : i32
    %c0_i32_0 = arith.constant 0 : i32
    return %arg0, %c0_i32, %arg1 : i32, i32, i32
  }
  func.func @transform_2(%arg0: i32, %arg1: i32) -> (i32, i32, i32) {
    %c0_i32 = arith.constant 0 : i32
    %c0_i32_0 = arith.constant 0 : i32
    return %arg0, %c0_i32, %arg1 : i32, i32, i32
  }
  func.func @transform_3(%arg0: i32, %arg1: i32) -> (i32, i32, i32) {
    %c0_i32 = arith.constant 0 : i32
    %c0_i32_0 = arith.constant 0 : i32
    return %arg0, %c0_i32, %arg1 : i32, i32, i32
  }
  func.func @transform_4(%arg0: i32, %arg1: i32) -> i32 {
    %c0_i32 = arith.constant 0 : i32
    %c0_i32_0 = arith.constant 0 : i32
    return %c0_i32 : i32
  }
}

</mosaic_0001>

<bundles_post_ra>
// kernel: abcnet_loss.1
= control target key start
LH: loop header
LB: loop body
LE: loop exit
PB: predicated region body
PF: predicated region fallthrough
CT: control target
= control target key end

     0   :  { %9 = vsyncpa [#allocation8], 0  ;;  %s1048_s15 = smov 0   ;;  %s1050_s16 = smov 0   ;;  %s1277_s0 = inlined_call_operand.vmem [shape: f32[2,4,256], index: 0, kind: input, shape index: {}]   ;;  %s1278_s1 = inlined_call_operand.vmem [shape: f32[2,4,256], index: 1, kind: input, shape index: {}]   ;;  %s1279_s2 = inlined_call_operand.vmem [shape: f32[2,4,256], index: 2, kind: input, shape index: {}]   ;;  %s1280_s3 = inlined_call_operand.vmem [shape: s32[2,1,256], index: 3, kind: input, shape index: {}]   ;;  %s1281_s4 = inlined_call_operand.vmem [shape: f32[8], index: 4, kind: output, shape index: {}]  }
   0x1   :  { %s1052_s17 = smov 0  }
   0x2 LB: > { %s883_s18 = sadd.s32 4294967295, %s1014_s17   ;;  %s27_s19 = sadd.s32 1, %s1010_s16  ;;  %s1014_s17 = sphi %s1052_s17, %s15_s17   ;;  %s1010_s16 = sphi %s1050_s16, %s1300_s16   ;;  %s1006_s15 = sphi %s1048_s15, %s1299_s15  }
   0x3   : > { %p29_p0 = scmp.ge.s32.totalorder %s27_s19, 2  ;;  %p886_p1 = scmp.ge.s32.totalorder %s1014_s17, 1 }
   0x4   : > { %p227_p2 = scmp.lt.s32.totalorder %s1014_s17, 3 }
   0x5   : > { %s1302_s19 = smov (%p29_p0, %s27_s19), 0 }
   0x6   : > { %p228_p3 = pnand %p886_p1, %p227_p2 }
   0x7   : > { %p279_p4 = scmp.lt.s32.totalorder (!%p228_p3), %s1006_s15, 1  ;;  %p317_p5 = scmp.eq.s32.totalorder (!%p228_p3), %s1006_s15, 0 }
   0x8   : > { %231 = sbr.rel (%p228_p3) target bundleno = 339 (0x153), region = 36 }
   0xf   : > { %s280_s20 = scalar_select %p279_p4, %s1006_s15, 1 }
  0x10   : > { %322 = sbr.rel (!%p317_p5) target bundleno = 23 (0x17), region = 40  ;;  %v323_v0 = vlaneseq (%p317_p5)  ;;  %v1016_v1 = vmov (%p317_p5), 0.0  }
  0x11   : > { %s903_s21 = sshll.u32 %s280_s20, 3  ;;  %s893_s22 = sshll.u32 %s280_s20, 1 }
  0x12   : > { %s286_s25 = scalar_lea.vmem %s1277_s0, %s903_s21  ;;  %s296_s28 = scalar_lea.vmem %s1278_s1, %s903_s21  ;;  %vm325_vm0 = vcmp.lt.s32.totalorder (%p317_p5), %v323_v0, 256 }
  0x13   : > { %s306_s5 = scalar_lea.vmem %s1279_s2, %s903_s21  ;;  %s315_s8 = scalar_lea.vmem %s1280_s3, %s893_s22  ;;  %327 = vst.msk [vmem:[#allocation2] sm:$0x3] (%p317_p5), %vm325_vm0, %v1016_v1  ;;  %328 = vst.msk [vmem:[#allocation3] sm:$0x3] (%p317_p5), %vm325_vm0, %v1016_v1 }
  0x14   : > { %329 = vst.msk [vmem:[#allocation6] sm:$0x3] (%p317_p5), %vm325_vm0, %v1016_v1  ;;  %330 = vst.msk [vmem:[#allocation4] sm:$0x3] (%p317_p5), %vm325_vm0, %v1016_v1 }
  0x15   : > { %331 = vst.msk [vmem:[#allocation5] sm:$0x3] (%p317_p5), %vm325_vm0, %v1016_v1 }
  0x17 PF: > { %v1084_v2 = vld [vmem:[%s286_s25] sm:$0xff]  ;;  %v337_v3 = vlaneseq  ;;  %vm356_vm1 = vcmask 1043456   ;;  %p628_p6 = scmp.eq.s32.totalorder %s1006_s15, 1  ;;  %v1017_v36 = vmov 0   ;;  %v1018_v41 = vmov 0.0  }
  0x18   : > { %v1088_v4 = vcombine.high %v1084_v2, %v1084_v2  ;;  %v357_v5 = vsel %vm356_vm1, %v1084_v2, -inf  ;;  %v1094_v8 = vld [vmem:[%s296_s28] sm:$0xff]  ;;  %vm1019_vm10 = vmmov 1   ;;  %vm645_vm0 = vcmask (%p628_p6), 1040384   ;;  %s1021_s9 = smov (%p628_p6), 0.0  }
  0x19   : > { %v1092_v6 = vshrl.u32 %v337_v3, 7  ;;  %v358_v7 = vrot.slane %v357_v5, 4  ;;  %v1096_v9 = vld [vmem:[%s306_s5] sm:$0xff]  ;;  %v490_v11 = vand.u32 2147483647, %v1094_v8  ;;  %vm1136_vm5 = vcmp.lt.s32.totalorder %v337_v3, 256 }
  0x1a   : > { %v364_v10 = vsel %vm356_vm1, %v1088_v4, -inf  ;;  %v563_v17 = vand.u32 2147483647, %v1096_v9  ;;  %v1109_v18 = vld [vmem:[%s315_s8] sm:$0x3]  ;;  %vm511_vm6 = vcmp.ge.f32.partialorder %v1094_v8, 0.0 }
  0x1b   : > { %v359_v12 = vmax.f32 %v357_v5, %v358_v7  ;;  %v365_v13 = vrot.slane %v364_v10, 4  ;;  %v1103_v14 = vsub.s32 0, %v1092_v6  ;;  %v1106_v15 = vsub.s32 1, %v1092_v6  ;;  %v485_v35 = vld [vmem:[#allocation6] sm:$0x3]  ;;  %765 = sst [smem:[#allocation7 + $0x5]] (%p628_p6), %s1021_s9 }
  0x1c   : > { %v491_v16 = vsub.f32 0.0, %v490_v11  ;;  %v564_v22 = vsub.f32 0.0, %v563_v17  ;;  %vm334_vm4 = vcmp.ne.s32.totalorder %v1109_v18, 255  ;;  %vm580_vm9 = vcmp.ge.f32.partialorder %v1096_v9, 0.0  ;;  %767 = sst [smem:[#allocation7 + $0x6]] (%p628_p6), %s1021_s9 }
  0x1d   : > { %v360_v19 = vrot.slane %v359_v12, 2  ;;  %v366_v20 = vmax.f32 %v364_v10, %v365_v13  ;;  %v342_v25 = vrot.slane %v1109_v18, %v1103_v14  ;;  %v346_v26 = vrot.slane %v1109_v18, %v1106_v15  ;;  %769 = sst [smem:[#allocation7 + $0x7]] (%p628_p6), %s1021_s9 }
  0x1e   : > { %v492_v21 = vmul.f32 1.442695, %v491_v16  ;;  %v565_v29 = vmul.f32 1.442695, %v564_v22  ;;  %v895_v42 = vsel %vm334_vm4, 1.0, %v1018_v41  ;;  %v494_v62 = vmax.f32 %v1094_v8, 0.0 }
  0x1f   : > { %v361_v23 = vmax.f32 %v359_v12, %v360_v19  ;;  %v367_v24 = vrot.slane %v366_v20, 2  ;;  %vm1118_vm2 = vcmp.eq.s32.totalorder %v1092_v6, %v342_v25  ;;  %vm1123_vm3 = vcmp.eq.s32.totalorder %v1092_v6, %v346_v26 }
  0x20   : > { %956 = vpow2.f32 %v492_v21  ;;  %v349_v37 = vsel %vm1118_vm2, 1, %v1017_v36  ;;  %v350_v38 = vsel %vm1123_vm3, 1, %v1017_v36  ;;  %v486_v44 = vadd.f32 %v895_v42, %v485_v35 }
  0x21   : > { %v362_v27 = vrot.slane %v361_v23, 1  ;;  %v368_v28 = vmax.f32 %v366_v20, %v367_v24  ;;  %958 = vpow2.f32 %v565_v29  ;;  %v512_v45 = vcombine.low %v349_v37, %v350_v38 }
  0x22   : > { %487 = vst.msk [vmem:[#allocation6] sm:$0x3] %vm1136_vm5, %v486_v44  ;;  %v896_v49 = vsel %vm1118_vm2, 1.0, %v1018_v41  ;;  %v897_v50 = vsel %vm1123_vm3, 1.0, %v1018_v41  ;;  %v567_v3 = vmax.f32 %v1096_v9, 0.0  ;;  %v424_v32 = vsel %vm356_vm1, %v1088_v4, 0.0 }
  0x23   : > { %v1115_v30 = vmax.f32 %v361_v23, %v362_v27  ;;  %v369_v31 = vrot.slane %v368_v28, 1  ;;  %vm1150_vm7 = vcmp.ne.s32.totalorder %v512_v45, 0  ;;  %v401_v54 = vmul.f32 %v896_v49, %v1084_v2 }
  0x24   : > { %v497_v55 = vcombine.low %v896_v49, %v897_v50  ;;  %vm514_vm8 = vmxor %vm511_vm6, %vm1150_vm7  ;;  %v402_v57 = vmul.f32 %v897_v50, %v1088_v4  ;;  %v417_v27 = vsel %vm356_vm1, %v1084_v2, 0.0 }
  0x25   : > { %v1128_v34 = vmax.f32 %v368_v28, %v369_v31  ;;  %v403_v59 = vsel %vm356_vm1, %v401_v54, 0.0  ;;  %vm1164_vm11 = vmxor %vm514_vm8, %vm1019_vm10  ;;  %v418_v45 = vrot.slane %v417_v27, 4 }
  0x26   : > { %v499_v63 = vmul.f32 %v497_v55, %v1094_v8  ;;  %v410_v1 = vsel %vm356_vm1, %v402_v57, 0.0  ;;  %v568_v5 = vmul.f32 %v1096_v9, %v497_v55  ;;  %vm581_vm12 = vmxor %vm580_vm9, %vm1150_vm7  ;;  %v404_v10 = vrot.slane %v403_v59, 4 }
  0x27   : > { %v373_v39 = vcombine.low %v1115_v30, %v1128_v34  ;;  %v411_v21 = vrot.slane %v410_v1, 4  ;;  %vm1181_vm13 = vmxor %vm581_vm12, %vm1019_vm10  ;;  %v419_v60 = vadd.f32 %v418_v45, %v417_v27 }
  0x28   : > { %v500_v22 = vsub.f32 %v494_v62, %v499_v63  ;;  %v569_v26 = vsub.f32 %v567_v3, %v568_v5  ;;  %v405_v44 = vadd.f32 %v404_v10, %v403_v59 }
  0x29   : > { %v375_v43 = vsub.f32 %v1084_v2, %v373_v39 }
  0x2a   : > { %v957_v47 = vpop.eup %956 }
  0x2b   : > { %v376_v46 = vmul.f32 1.442695, %v375_v43  ;;  %v501_v48 = vadd.f32 1.0, %v957_v47  ;;  %v1154_v52 = vpop.eup %958  ;;  %v504_v53 = vmul.f32 -0.5, %v957_v47  ;;  %v507_v0 = vand.u32 2147483647, %v957_v47 }
  0x2c   : > { %v570_v56 = vadd.f32 1.0, %v1154_v52  ;;  %v573_v61 = vmul.f32 -0.5, %v1154_v52  ;;  %v516_v11 = vsel %vm1164_vm11, %v957_v47, 1.0  ;;  %v576_v17 = vand.u32 2147483647, %v1154_v52 }
  0x2d   : > { %960 = vpow2.f32 %v376_v46  ;;  %v505_v58 = vadd.f32 1.0, %v504_v53  ;;  %vm1185_vm14 = vcmp.lt.f32.partialorder %v507_v0, 0.0004427343  ;;  %v583_v35 = vsel %vm1181_vm13, %v1154_v52, 1.0 }
  0x2e   : > { %962 = vlog2.f32 %v501_v48  ;;  %v574_v8 = vadd.f32 1.0, %v573_v61  ;;  %vm1200_vm15 = vcmp.lt.f32.partialorder %v576_v17, 0.0004427343  ;;  %v425_v46 = vrot.slane %v424_v32, 4 }
  0x2f   : > { %964 = vrcp.f32 %v501_v48  ;;  %v506_v12 = vmul.f32 %v957_v47, %v505_v58  ;;  %v412_v53 = vadd.f32 %v411_v21, %v410_v1  ;;  %v406_v58 = vrot.slane %v405_v44, 2 }
  0x30   : > { %966 = vlog2.f32 %v570_v56  ;;  %v575_v37 = vmul.f32 %v1154_v52, %v574_v8  ;;  %v426_v61 = vadd.f32 %v425_v46, %v424_v32 }
  0x31   : > { %968 = vrcp.f32 %v570_v56  ;;  %v413_v1 = vrot.slane %v412_v53, 2  ;;  %v407_v17 = vadd.f32 %v406_v58, %v405_v44 }
  0x32   : > { %v427_v21 = vrot.slane %v426_v61, 2 }
  0x34   : > { %v428_v32 = vadd.f32 %v427_v21, %v426_v61 }
  0x36   : > { %v429_v46 = vrot.slane %v428_v32, 1 }
  0x37   : > { %v961_v7 = vpop.eup %960 }
  0x38   : > { %v379_v13 = vcombine.high %v961_v7, %v961_v7  ;;  %v381_v16 = vsel %vm356_vm1, %v961_v7, 0.0  ;;  %v963_v19 = vpop.eup %962 }
  0x39   : > { %v382_v20 = vrot.slane %v381_v16, 4  ;;  %v965_v24 = vpop.eup %964  ;;  %v503_v28 = vmul.f32 0.6931472, %v963_v19  ;;  %v1020_v19 = vmov 1966171168  }
  0x3a   : > { %v388_v25 = vsel %vm356_vm1, %v379_v13, 0.0  ;;  %v519_v33 = vmul.f32 %v965_v24, %v516_v11  ;;  %v967_v2 = vpop.eup %966 }
  0x3b   : > { %v383_v29 = vadd.f32 %v382_v20, %v381_v16  ;;  %v389_v31 = vrot.slane %v388_v25, 4  ;;  %v509_v36 = vsel %vm1185_vm14, %v506_v12, %v503_v28  ;;  %v969_v4 = vpop.eup %968  ;;  %v572_v47 = vmul.f32 0.6931472, %v967_v2 }
  0x3c   : > { %v510_v42 = vadd.f32 %v509_v36, %v500_v22  ;;  %v520_v43 = vmul.f32 %v519_v33, %v519_v33  ;;  %v586_v51 = vmul.f32 %v969_v4, %v583_v35  ;;  %v420_v12 = vrot.slane %v419_v60, 2 }
  0x3d   : > { %v384_v39 = vrot.slane %v383_v29, 2  ;;  %v390_v41 = vadd.f32 %v389_v31, %v388_v25  ;;  %v578_v52 = vsel %vm1200_vm15, %v575_v37, %v572_v47  ;;  %v438_v20 = vunpack.c.l.s4 %v1020_v19 }
  0x3e   : > { %v521_v50 = vmul.f32 %v520_v43, %v510_v42  ;;  %v579_v57 = vadd.f32 %v578_v52, %v569_v26  ;;  %v587_v62 = vmul.f32 %v586_v51, %v586_v51  ;;  %v414_v25 = vadd.f32 %v413_v1, %v412_v53 }
  0x3f   : > { %v385_v48 = vadd.f32 %v384_v39, %v383_v29  ;;  %v391_v49 = vrot.slane %v390_v41, 2  ;;  %v421_v27 = vadd.f32 %v420_v12, %v419_v60  ;;  %v408_v36 = vrot.slane %v407_v17, 1  ;;  %v488_v12 = vld [vmem:[#allocation4] sm:$0x3] }
  0x40   : > { %v522_v56 = vmul.f32 0.5, %v521_v50  ;;  %v588_v7 = vmul.f32 %v587_v62, %v579_v57  ;;  %v439_v37 = vunpack.c.0.s8 %v438_v20  ;;  %v415_v39 = vrot.slane %v414_v25, 1 }
  0x41   : > { %v386_v54 = vrot.slane %v385_v48, 1  ;;  %v392_v55 = vadd.f32 %v391_v49, %v390_v41  ;;  %v422_v43 = vrot.slane %v421_v27, 1  ;;  %v409_v50 = vadd.f32 %v408_v36, %v407_v17 }
  0x42   : > { %v524_v0 = vcombine.high %v522_v56, %v522_v56  ;;  %v526_v3 = vsel %vm356_vm1, %v522_v56, 0.0  ;;  %v589_v8 = vmul.f32 0.5, %v588_v7  ;;  %v442_v51 = vsub.s32 %v439_v37, %v1092_v6 }
  0x43   : > { %v387_v59 = vadd.f32 %v386_v54, %v385_v48  ;;  %v393_v63 = vrot.slane %v392_v55, 1  ;;  %v527_v5 = vrot.slane %v526_v3, 4  ;;  %v416_v54 = vadd.f32 %v415_v39, %v414_v25 }
  0x44   : > { %v533_v11 = vsel %vm356_vm1, %v524_v0, 0.0  ;;  %v591_v23 = vcombine.high %v589_v8, %v589_v8  ;;  %v593_v24 = vsel %vm356_vm1, %v589_v8, 0.0  ;;  %v423_v60 = vadd.f32 %v422_v43, %v421_v27 }
  0x45   : > { %v394_v10 = vadd.f32 %v393_v63, %v392_v55  ;;  %970 = vlog2.f32 %v387_v59  ;;  %v528_v13 = vadd.f32 %v527_v5, %v526_v3  ;;  %v534_v16 = vrot.slane %v533_v11, 4 }
  0x46   : > { %v594_v26 = vrot.slane %v593_v24, 4  ;;  %v600_v31 = vsel %vm356_vm1, %v591_v23, 0.0  ;;  %v430_v62 = vadd.f32 %v429_v46, %v428_v32  ;;  %v431_v23 = vld [vmem:[#allocation2] sm:$0x3] }
  0x47   : > { %972 = vlog2.f32 %v394_v10  ;;  %v529_v22 = vrot.slane %v528_v13, 2  ;;  %v535_v9 = vadd.f32 %v534_v16, %v533_v11  ;;  %v601_v35 = vrot.slane %v600_v31, 4 }
  0x48   : > { %v595_v33 = vadd.f32 %v594_v26, %v593_v24 }
  0x49   : > { %v530_v28 = vadd.f32 %v529_v22, %v528_v13  ;;  %v536_v29 = vrot.slane %v535_v9, 2  ;;  %v602_v42 = vadd.f32 %v601_v35, %v600_v31 }
  0x4a   : > { %v596_v41 = vrot.slane %v595_v33, 2 }
  0x4b   : > { %v531_v38 = vrot.slane %v530_v28, 1  ;;  %v537_v2 = vadd.f32 %v536_v29, %v535_v9  ;;  %v603_v48 = vrot.slane %v602_v42, 2 }
  0x4c   : > { %v597_v47 = vadd.f32 %v596_v41, %v595_v33 }
  0x4d   : > { %v532_v4 = vadd.f32 %v531_v38, %v530_v28  ;;  %v538_v44 = vrot.slane %v537_v2, 1  ;;  %v604_v56 = vadd.f32 %v603_v48, %v602_v42  ;;  %v459_v28 = vld [vmem:[#allocation3] sm:$0x3] }
  0x4e   : > { %v598_v55 = vrot.slane %v597_v47, 1 }
  0x4f   : > { %v971_v45 = vpop.eup %970  ;;  %v539_v53 = vadd.f32 %v538_v44, %v537_v2  ;;  %v605_v63 = vrot.slane %v604_v56, 1 }
  0x50   : > { %v396_v49 = vmul.f32 0.6931472, %v971_v45  ;;  %v599_v59 = vadd.f32 %v598_v55, %v597_v47  ;;  %v738_v45 = vld [vmem:[#allocation6] sm:$0x3] (%p628_p6) }
  0x51   : > { %v973_v52 = vpop.eup %972  ;;  %v542_v61 = vcombine.low %v532_v4, %v539_v53  ;;  %v606_v10 = vadd.f32 %v605_v63, %v604_v56  ;;  %v743_v56 = vrot.slane (%p628_p6), %v738_v45, %v1103_v14 }
  0x52   : > { %v398_v57 = vmul.f32 0.6931472, %v973_v52  ;;  %v399_v58 = vadd.f32 %v396_v49, %v1115_v30 }
  0x53   : > { %v549_v7 = vrot.slane %v542_v61, %v442_v51  ;;  %v609_v16 = vcombine.low %v599_v59, %v606_v10  ;;  %v750_v61 = vsel (%p628_p6), %vm645_vm0, %v743_v56, 0.0 }
  0x54   : > { %v400_v0 = vadd.f32 %v398_v57, %v1128_v34  ;;  %v432_v3 = vsub.f32 %v399_v58, %v409_v50  ;;  %v460_v5 = vmul.f32 4.0, %v399_v58  ;;  %v561_v34 = vld [vmem:[#allocation5] sm:$0x3] }
  0x55   : > { %v556_v13 = vrot.slane %v549_v7, %v442_v51  ;;  %v616_v20 = vrot.slane %v609_v16, %v442_v51 }
  0x56   : > { %v433_v6 = vsub.f32 %v400_v0, %v416_v54  ;;  %v461_v1 = vmul.f32 4.0, %v400_v0  ;;  %v462_v11 = vsub.f32 %v460_v5, %v423_v60  ;;  %v747_v60 = vrot.slane (%p628_p6), %v738_v45, %v1106_v15 }
  0x57   : > { %v558_v30 = vsel %vm334_vm4, %v556_v13, 0.0  ;;  %v623_v9 = vrot.slane %v616_v20, %v442_v51 }
  0x58   : > { %v436_v8 = vcombine.low %v432_v3, %v433_v6  ;;  %v463_v17 = vsub.f32 %v461_v1, %v430_v62  ;;  %v559_v19 = vadd.f32 %v558_v30, %v488_v12  ;;  %v751_v62 = vsel (%p628_p6), %vm645_vm0, %v747_v60, 0.0 }
  0x59   : > { %v625_v26 = vsel %vm334_vm4, %v623_v9, 0.0  ;;  %v752_v59 = vadd.f32 (%p628_p6), %v751_v62, %v750_v61 }
  0x5a   : > { %v443_v21 = vrot.slane %v436_v8, %v442_v51  ;;  %v466_v22 = vcombine.low %v462_v11, %v463_v17  ;;  %560 = vst.msk [vmem:[#allocation4] sm:$0x3] %vm1136_vm5, %v559_v19  ;;  %v626_v31 = vadd.f32 %v625_v26, %v561_v34 }
  0x5c   : > { %v450_v24 = vrot.slane %v443_v21, %v442_v51  ;;  %v473_v25 = vrot.slane %v466_v22, %v442_v51  ;;  %627 = vst.msk [vmem:[#allocation5] sm:$0x3] %vm1136_vm5, %v626_v31 }
  0x5d   : > { %632 = sbr.rel (!%p628_p6) target bundleno = 323 (0x143), region = 44 }
  0x5e   : > { %v452_v27 = vsel %vm334_vm4, %v450_v24, 0.0  ;;  %v480_v29 = vrot.slane %v473_v25, %v442_v51 }
  0x5f   : > { %v453_v32 = vadd.f32 %v452_v27, %v431_v23 }
  0x60   : > { %v482_v33 = vsel %vm334_vm4, %v480_v29, 0.0 }
  0x61   : > { %458 = vst.msk [vmem:[#allocation2] sm:$0x3] %vm1136_vm5, %v453_v32  ;;  %v483_v35 = vadd.f32 %v482_v33, %v459_v28  ;;  %v686_v36 = vld [vmem:[#allocation4] sm:$0x3] (%p628_p6) }
  0x62   : > { %v691_v38 = vrot.slane (%p628_p6), %v686_v36, %v1103_v14  ;;  %v695_v18 = vrot.slane (%p628_p6), %v686_v36, %v1106_v15 }
  0x63   : > { %484 = vst.msk [vmem:[#allocation3] sm:$0x3] %vm1136_vm5, %v483_v35  ;;  %v712_v41 = vld [vmem:[#allocation5] sm:$0x3] (%p628_p6) }
  0x64   : > { %v717_v43 = vrot.slane %v712_v41, %v1103_v14  ;;  %v721_v40 = vrot.slane %v712_v41, %v1106_v15  ;;  %v698_v46 = vsel %vm645_vm0, %v691_v38, 0.0  ;;  %v699_v47 = vsel %vm645_vm0, %v695_v18, 0.0 }
  0x65   : > { %v700_v50 = vadd.f32 %v699_v47, %v698_v46 }
  0x66   : > { %v724_v53 = vsel %vm645_vm0, %v717_v43, 0.0  ;;  %v725_v52 = vsel %vm645_vm0, %v721_v40, 0.0 }
  0x67   : > { %701 = vadd.xlane.f32.xlu1 %v700_v50  ;;  %v726_v57 = vadd.f32 %v725_v52, %v724_v53 }
  0x68   : > { %v633_v37 = vld [vmem:[#allocation2] sm:$0x3] }
  0x69   : > { %v638_v2 = vrot.slane %v633_v37, %v1103_v14  ;;  %v642_v39 = vrot.slane %v633_v37, %v1106_v15 }
  0x6a   : > { %v660_v42 = vld [vmem:[#allocation3] sm:$0x3] }
  0x6b   : > { %v665_v4 = vrot.slane %v660_v42, %v1103_v14  ;;  %v669_v44 = vrot.slane %v660_v42, %v1106_v15  ;;  %v646_v48 = vsel %vm645_vm0, %v638_v2, 0.0  ;;  %v647_v49 = vsel %vm645_vm0, %v642_v39, 0.0  ;;  %727 = vadd.xlane.f32.xlu1 %v726_v57 }
  0x6c   : > { %v648_v51 = vadd.f32 %v647_v49, %v646_v48 }
  0x6d   : > { %v672_v54 = vsel %vm645_vm0, %v665_v4, 0.0  ;;  %v673_v55 = vsel %vm645_vm0, %v669_v44, 0.0 }
  0x6e   : > { %649 = vadd.xlane.f32.xlu0 %v648_v51  ;;  %v674_v58 = vadd.f32 %v673_v55, %v672_v54 }
  0x72   : > { %675 = vadd.xlane.f32.xlu0 %v674_v58 }
  0x76   : > { %753 = vadd.xlane.f32.xlu0 %v752_v59 }
  0xf4   : > { %v702_v63 = vpop.xlane.xlu1 %701 }
  0xf5   : > { %v703_v0 = vrot.slane %v702_v63, 4 }
  0xf7   : > { %v704_v5 = vadd.f32 %v703_v0, %v702_v63 }
  0xf8   : > { %v728_v10 = vpop.xlane.xlu1 %727 }
  0xf9   : > { %v705_v6 = vrot.slane %v704_v5, 2  ;;  %v729_v11 = vrot.slane %v728_v10, 4 }
  0xfb   : > { %v650_v14 = vpop.xlane.xlu0 %649  ;;  %v730_v13 = vadd.f32 %v729_v11, %v728_v10  ;;  %v706_v30 = vadd.f32 %v705_v6, %v704_v5 }
  0xfc   : > { %v651_v3 = vrot.slane %v650_v14, 4 }
  0xfd   : > { %v731_v19 = vrot.slane %v730_v13, 2  ;;  %v707_v25 = vrot.slane %v706_v30, 1 }
  0xfe   : > { %v652_v7 = vadd.f32 %v651_v3, %v650_v14 }
  0xff   : > { %v676_v15 = vpop.xlane.xlu0 %675  ;;  %v732_v34 = vadd.f32 %v731_v19, %v730_v13  ;;  %v708_v33 = vadd.f32 %v707_v25, %v706_v30 }
 0x100   : > { %v653_v1 = vrot.slane %v652_v7, 2  ;;  %v677_v12 = vrot.slane %v676_v15, 4 }
 0x101   : > { %v733_v28 = vrot.slane %v732_v34, 1 }
 0x102   : > { %v678_v16 = vadd.f32 %v677_v12, %v676_v15  ;;  %v654_v8 = vadd.f32 %v653_v1, %v652_v7 }
 0x103   : > { %v754_v17 = vpop.xlane.xlu0 %753  ;;  %v734_v32 = vadd.f32 %v733_v28, %v732_v34 }
 0x104   : > { %v679_v20 = vrot.slane %v678_v16, 2  ;;  %v755_v21 = vrot.slane %v754_v17, 4  ;;  %v655_v22 = vrot.slane %v654_v8, 1 }
 0x106   : > { %v756_v9 = vadd.f32 %v755_v21, %v754_v17  ;;  %v656_v23 = vadd.f32 %v655_v22, %v654_v8  ;;  %v680_v24 = vadd.f32 %v679_v20, %v678_v16 }
 0x108   : > { %v757_v26 = vrot.slane %v756_v9, 2  ;;  %908 = vpush %v656_v23  ;;  %v681_v27 = vrot.slane %v680_v24, 1 }
 0x10a   : > { %v758_v29 = vadd.f32 %v757_v26, %v756_v9  ;;  %v682_v31 = vadd.f32 %v681_v27, %v680_v24 }
 0x10c   : > { %910 = vpush %v682_v31  ;;  %v759_v35 = vrot.slane %v758_v29, 1 }
 0x10d   : > { %912 = vpush %v708_v33 }
 0x10e   : > { %914 = vpush %v734_v32  ;;  %v760_v36 = vadd.f32 %v759_v35, %v758_v29 }
 0x110   : > { %916 = vpush %v760_v36 }
 0x139   : > { %s909_s10 = spop %908 }
 0x13a   : > { %659 = sst [smem:[#allocation7]] %s909_s10 }
 0x13d   : > { %s911_s11 = spop %910 }
 0x13e   : > { %685 = sst [smem:[#allocation7 + $0x1]] %s911_s11  ;;  %s913_s12 = spop %912 }
 0x13f   : > { %711 = sst [smem:[#allocation7 + $0x2]] %s913_s12  ;;  %s915_s13 = spop %914 }
 0x140   : > { %737 = sst [smem:[#allocation7 + $0x3]] %s915_s13 }
 0x141   : > { %s917_s14 = spop %916 }
 0x142   : > { %763 = sst [smem:[#allocation7 + $0x4]] %s917_s14 }
 0x143 PF: > { %p1253_p7 = scmp.eq.s32.totalorder %s883_s18, 1  ;;  %s777_s22 = sshll.u32 %s1281_s4, 4  ;;  %s778_s22 = int_to_ptr.vmem [resolvable:$true] %s777_s22 }
 0x144   : > { %s974_s23 = scalar_lea.vmem %s778_s22, 16  ;;  %p981_p11 = scmp.lt.s32.totalorder %s778_s22, %s778_s22 }
 0x145   : > { %p975_p8 = scmp.ne.s32.totalorder %s778_s22, %s974_s23  ;;  %p982_p12 = scmp.lt.s32.totalorder %s974_s23, %s974_s23 }
 0x147   : > { %p976_p9 = pnand %p975_p8, %p1253_p7  ;;  %p983_p13 = por %p982_p12, %p981_p11 }
 0x149   : > { %p977_p10 = pneg %p976_p9 }
 0x14b   : > { %p984_p0 = pnand %p983_p13, %p977_p10 }
 0x14d   : > { %987 = shalt.err (!%p984_p0)
}
 0x14e   : > { %s1022_s18 = smov [#allocation7]  }
 0x14f   : > { %919 = dma.smem_to_vmem (%p1253_p7), %s1022_s18, 16, %s778_s22, [#allocation8]  }
 0x150   : > { %1001 = dma.done.wait (%p1253_p7), [#allocation8], 16  }
 0x151   : > { %1003 = vsyncadd (%p1253_p7), [#allocation8], 4294967280 }
 0x152   : > { %785 = sfence }
 0x153 PF: > { %s15_s17 = sadd.s32 1, %s1014_s17   ;;  %s1299_s15 = smov %s1010_s16 }
 0x154   : > { %p12_p1 = scmp.ge.s32.totalorder %s15_s17, 4   ;;  %s1300_s16 = smov %s1302_s19 }
 0x156   :  { %14 = sbr.rel (!%p12_p1) target bundleno = 2 (0x2), region = 88 }
 0x15d   :  { %791 = vsyncpa [#allocation8], 1 }
 0x15e   :  { %793 = vsyncpa [#allocation8 + $0x1], 1 }

</bundles_post_ra>
